<compile_context>
chip_gen: v7x
topology: tpu7x:2x2x1
jax: 0.10.0
libtpu: 0.0.40
codegen_flags: <defaults>
</compile_context>

<pallas_src>
import jax
import jax.numpy as jnp
from jax.experimental import pallas as pl
from jax.experimental.pallas import tpu as pltpu

# ----- synthetic "config" (mirrors the module's params dict) ----------------
# head_size = n_emb // n_heads = 128 so the flattened lane dim (nh*hs = 512)
# is a multiple of 128 (lane-dense, TPU-natural head size).  Shapes stay tiny.
params = {
    "block_size": 16,   # max_seq_len
    "n_emb": 512,
    "n_heads": 4,
}


def build_rope_cache(n_emb, n_heads, max_seq_len, base=10000.0):
    """Deterministic RoPE cache, identical math to the PyTorch rope_init."""
    dim = n_emb
    theta = jnp.power(base, -2.0 * jnp.arange(0, dim // 2, dtype=jnp.float32) / dim)
    seq_idx = jnp.arange(max_seq_len, dtype=jnp.float32)
    idx_theta = jnp.einsum("i,j->ij", seq_idx, theta).astype(jnp.float32)
    hs_half = n_emb // n_heads // 2
    idx_theta = idx_theta[:, :hs_half]
    cos = jnp.cos(idx_theta)   # [max_seq_len, hs_half]
    sin = jnp.sin(idx_theta)   # [max_seq_len, hs_half]
    return cos, sin


def expand_rope_tables(cos_cache, sin_cache, n_heads, head_size):
    """Expand [max_seq, hs//2] cos/sin into TWO lane-dense [max_seq, nh*hs]
    f32 tables with pair duplication, head tiling and sin signs folded in
    (init-time, cache-sized work):

      cos_t[.., 2j] = cos_t[.., 2j+1] = cos_j
      sin_t[.., 2j] = -sin_j ; sin_t[.., 2j+1] = +sin_j
    """
    max_seq, hh = cos_cache.shape
    assert head_size == 2 * hh
    cos_hs = jnp.stack([cos_cache, cos_cache], axis=-1).reshape(max_seq, head_size)
    sin_hs = jnp.stack([-sin_cache, sin_cache], axis=-1).reshape(max_seq, head_size)
    tile = lambda t: jnp.tile(t, (1, n_heads))          # all heads share freqs
    return tile(cos_hs), tile(sin_hs)


# ----- Pallas kernel ---------------------------------------------------------
def rope_kernel(cos_ref, sin_ref, x_ref, o_ref):
    # cos/sin: [tile_s, W] f32 ; x/o: [b_tile, tile_s, W] (any float dtype).
    # Compute in f32 (v5e has no bf16 VALU); cast back on store.
    x = x_ref[...].astype(jnp.float32)            # [b_tile, tile_s, W]
    w = x.shape[-1]
    # pltpu.roll == jnp.roll: result[..., i] = x[..., (i - shift) % w]
    x_next = pltpu.roll(x, w - 1, axis=2)         # x_next[..., i] = x[..., i+1]
    x_prev = pltpu.roll(x, 1, axis=2)             # x_prev[..., i] = x[..., i-1]
    # Pair partner: even lanes take their odd neighbour, odd lanes the even
    # one.  Wrap-around lanes of the two rolls are never selected (W is even).
    lane = jax.lax.broadcasted_iota(jnp.int32, x.shape, dimension=2)
    x_swapped = jnp.where((lane & 1) == 0, x_next, x_prev)
    cos = cos_ref[...][None]                      # [1, tile_s, W] broadcast
    sin = sin_ref[...][None]
    o_ref[...] = (x * cos + x_swapped * sin).astype(o_ref.dtype)


# ----- tiling / VMEM budgeting ----------------------------------------------
def _vmem_budget():
    """(block_budget_bytes, vmem_limit_bytes) derived per TPU generation."""
    cap = 64 * 1024 * 1024                        # conservative fallback (v7x per-TC)
    try:
        info = pltpu.get_tpu_info()
        cap = int(getattr(info, "vmem_capacity_bytes", cap))
    except Exception:
        pass
    mib = 1024 * 1024
    block_budget = min(max(cap // 2 - 4 * mib, 8 * mib), 48 * mib)
    vmem_limit = min(cap - 8 * mib, block_budget + 16 * mib)
    return block_budget, vmem_limit


def _pick_tiles(b, seq, w, x_itemsize, tbl_itemsize, budget):
    """Choose (b_tile, tile_s) so that the double-buffered x/out/cos/sin blocks
    fit the budget.  Sub-32-bit x needs a 16-row minimum seq tile."""
    min_s = 16 if x_itemsize < 4 else 8

    def blocks_bytes(b_tile, tile_s):
        xb = 2 * b_tile * tile_s * w * x_itemsize       # x + out blocks
        tb = 2 * tile_s * w * tbl_itemsize              # cos + sin blocks
        return 2 * (xb + tb)                            # double-buffered

    s0 = seq if seq <= min_s else min_s
    b_tile = b
    while b_tile > 1 and blocks_bytes(b_tile, s0) > budget:
        b_tile = (b_tile + 1) // 2

    denom = 2 * (2 * b_tile * x_itemsize + 2 * tbl_itemsize) * w
    tile_s = budget // max(denom, 1)
    if tile_s >= seq:
        tile_s = seq                                    # full dim -> always legal
    else:
        tile_s = min(seq, max(min_s, (tile_s // min_s) * min_s))
    return b_tile, tile_s


def rope_forward(x, cos_t, sin_t, *, donate_x=False):
    """
    Args:
      x: [b, seq_len, nh, hs] float32 or bfloat16 (contiguous in this layout).
      cos_t, sin_t: [max_seq_len, nh*hs] f32 expanded tables.
      donate_x: alias x's buffer for the output (use only if caller donates x).
    Returns:
      rotated tensor, same shape/dtype as x.
    """
    b, seq_len, nh, hs = x.shape
    w = nh * hs
    assert w % 128 == 0, "nh*hs must be a multiple of 128 for lane-dense stores"
    assert cos_t.shape[0] >= seq_len, "seq_len exceeds the RoPE cache (max_seq_len)"
    x3 = x.reshape(b, seq_len, w)                 # free contiguous reshape
    cos_s = cos_t[:seq_len]
    sin_s = sin_t[:seq_len]

    block_budget, vmem_limit = _vmem_budget()
    b_tile, tile_s = _pick_tiles(
        b, seq_len, w, x.dtype.itemsize, cos_s.dtype.itemsize, block_budget)

    # Batch is the fastest grid axis -> cos/sin block index unchanged across
    # batch steps, so their re-DMA is elided (tables read ~once per seq tile).
    grid = (pl.cdiv(seq_len, tile_s), pl.cdiv(b, b_tile))

    tbl_spec = pl.BlockSpec((tile_s, w), lambda si, bi: (si, 0))
    x_spec = pl.BlockSpec((b_tile, tile_s, w), lambda si, bi: (bi, si, 0))

    cost = pl.CostEstimate(
        flops=7 * x.size,                         # rolls/select/3 mul/2 add, approx
        transcendentals=0,
        bytes_accessed=2 * x.size * x.dtype.itemsize
        + 2 * seq_len * w * cos_s.dtype.itemsize,
    )

    out = pl.pallas_call(
        rope_kernel,
        out_shape=jax.ShapeDtypeStruct((b, seq_len, w), x.dtype),
        grid_spec=pltpu.PrefetchScalarGridSpec(
            num_scalar_prefetch=0,
            grid=grid,
            in_specs=[tbl_spec, tbl_spec, x_spec],
            out_specs=x_spec,
        ),
        compiler_params=pltpu.CompilerParams(
            dimension_semantics=("parallel", "parallel"),
            vmem_limit_bytes=int(vmem_limit),
        ),
        cost_estimate=cost,
        input_output_aliases=({2: 0} if donate_x else {}),
    )(cos_s, sin_s, x3)

    return out.reshape(b, seq_len, nh, hs)        # free contiguous reshape


# ----- pure-JAX reference (mirrors the PyTorch forward) ----------------------
def rope_reference(x, cos_cache, sin_cache):
    b, seq_len, nh, hs = x.shape
    hh = hs // 2
    cos = cos_cache[:seq_len, :hh][None, :, None, :]
    sin = sin_cache[:seq_len, :hh][None, :, None, :]
    xr = x.astype(jnp.float32).reshape(b, seq_len, nh, hh, 2)
    xe, xo = xr[..., 0], xr[..., 1]
    rotated = jnp.stack([xe * cos - xo * sin, xo * cos + xe * sin], axis=-1)
    return rotated.reshape(b, seq_len, nh, hs).astype(x.dtype)


if __name__ == "__main__":
    n_emb = params["n_emb"]
    n_heads = params["n_heads"]
    block_size = params["block_size"]
    hs = n_emb // n_heads      # 128
    b, seq_len = 2, 8

    cos_cache, sin_cache = build_rope_cache(n_emb, n_heads, block_size)
    cos_t, sin_t = expand_rope_tables(cos_cache, sin_cache, n_heads, hs)

    key = jax.random.PRNGKey(0)
    x = jax.random.normal(key, (b, seq_len, n_heads, hs), dtype=jnp.float32)

    # f32 path (matches the PyTorch module exactly)
    out = jax.block_until_ready(rope_forward(x, cos_t, sin_t))
    ref = rope_reference(x, cos_cache, sin_cache)
    assert out.shape == x.shape and out.dtype == x.dtype
    assert jnp.allclose(out, ref, atol=1e-5, rtol=1e-5)

    # bf16 I/O path (half the HBM traffic); compute still runs in f32 in-kernel.
    x_bf16 = x.astype(jnp.bfloat16)
    out_bf16 = jax.block_until_ready(rope_forward(x_bf16, cos_t, sin_t))
    ref_bf16 = rope_reference(x_bf16, cos_cache, sin_cache)
    assert out_bf16.shape == x.shape and out_bf16.dtype == jnp.bfloat16
    assert jnp.allclose(out_bf16.astype(jnp.float32),
                        ref_bf16.astype(jnp.float32), atol=2e-2, rtol=2e-2)

    print("KERNEL_OK")
</pallas_src>

<mosaic_0001>
module attributes {stable_mosaic.version = 11 : i64} {
  func.func @rope_kernel(%arg0: i32, %arg1: i32, %arg2: memref<8x512xf32, #tpu.memory_space<vmem>>, %arg3: memref<8x512xf32, #tpu.memory_space<vmem>>, %arg4: memref<2x8x512xf32, #tpu.memory_space<vmem>>, %arg5: memref<2x8x512xf32, #tpu.memory_space<vmem>>) attributes {dimension_semantics = [#tpu.dimension_semantics<parallel>, #tpu.dimension_semantics<parallel>], iteration_bounds = array<i64: 1, 1>, scalar_prefetch = 0 : i64, scratch_operands = 0 : i64, tpu.core_type = #tpu.core_type<tc>, window_params = [{transform_indices = @transform_0, window_bounds = array<i64: 8, 512>}, {transform_indices = @transform_1, window_bounds = array<i64: 8, 512>}, {transform_indices = @transform_2, window_bounds = array<i64: 2, 8, 512>}, {transform_indices = @transform_3, window_bounds = array<i64: 2, 8, 512>}]} {
    %c0 = arith.constant 0 : index
    %c0_0 = arith.constant 0 : index
    %c0_1 = arith.constant 0 : index
    %0 = vector.load %arg4[%c0, %c0_0, %c0_1] : memref<2x8x512xf32, #tpu.memory_space<vmem>>, vector<2x8x512xf32>
    %c511_i32 = arith.constant 511 : i32
    %1 = tpu.dynamic_rotate %0 by %c511_i32 dim 2 : vector<2x8x512xf32>, i32 -> vector<2x8x512xf32>
    %c1_i32 = arith.constant 1 : i32
    %2 = tpu.dynamic_rotate %0 by %c1_i32 dim 2 : vector<2x8x512xf32>, i32 -> vector<2x8x512xf32>
    %3 = tpu.iota {dimensions = array<i32: 2>} : vector<2x8x512xi32>
    %c1_i32_2 = arith.constant 1 : i32
    %4 = vector.broadcast %c1_i32_2 : i32 to vector<2x8x512xi32>
    %5 = arith.andi %3, %4 : vector<2x8x512xi32>
    %c0_i32 = arith.constant 0 : i32
    %6 = vector.broadcast %c0_i32 : i32 to vector<2x8x512xi32>
    %7 = arith.cmpi eq, %5, %6 : vector<2x8x512xi32>
    %8 = arith.select %7, %1, %2 : vector<2x8x512xi1>, vector<2x8x512xf32>
    %c0_3 = arith.constant 0 : index
    %c0_4 = arith.constant 0 : index
    %9 = vector.load %arg2[%c0_3, %c0_4] : memref<8x512xf32, #tpu.memory_space<vmem>>, vector<8x512xf32>
    %10 = vector.shape_cast %9 : vector<8x512xf32> to vector<1x8x512xf32>
    %c0_5 = arith.constant 0 : index
    %c0_6 = arith.constant 0 : index
    %11 = vector.load %arg3[%c0_5, %c0_6] : memref<8x512xf32, #tpu.memory_space<vmem>>, vector<8x512xf32>
    %12 = vector.shape_cast %11 : vector<8x512xf32> to vector<1x8x512xf32>
    %13 = vector.broadcast %10 : vector<1x8x512xf32> to vector<2x8x512xf32>
    %14 = arith.mulf %0, %13 : vector<2x8x512xf32>
    %15 = vector.broadcast %12 : vector<1x8x512xf32> to vector<2x8x512xf32>
    %16 = arith.mulf %8, %15 : vector<2x8x512xf32>
    %17 = arith.addf %14, %16 : vector<2x8x512xf32>
    %c0_7 = arith.constant 0 : index
    %c0_8 = arith.constant 0 : index
    %c0_9 = arith.constant 0 : index
    %18 = vector.load %arg5[%c0_7, %c0_8, %c0_9] : memref<2x8x512xf32, #tpu.memory_space<vmem>>, vector<2x8x512xf32>
    tpu.vector_store %arg5[%c0_7, %c0_8, %c0_9], %17 {strides = array<i32>} : memref<2x8x512xf32, #tpu.memory_space<vmem>>, vector<2x8x512xf32>,
    return
  }
  func.func @transform_0(%arg0: i32, %arg1: i32) -> (i32, i32) {
    %c0_i32 = arith.constant 0 : i32
    %c0_i32_0 = arith.constant 0 : i32
    return %arg0, %c0_i32 : i32, i32
  }
  func.func @transform_1(%arg0: i32, %arg1: i32) -> (i32, i32) {
    %c0_i32 = arith.constant 0 : i32
    %c0_i32_0 = arith.constant 0 : i32
    return %arg0, %c0_i32 : i32, i32
  }
  func.func @transform_2(%arg0: i32, %arg1: i32) -> (i32, i32, i32) {
    %c0_i32 = arith.constant 0 : i32
    %c0_i32_0 = arith.constant 0 : i32
    return %arg1, %arg0, %c0_i32 : i32, i32, i32
  }
  func.func @transform_3(%arg0: i32, %arg1: i32) -> (i32, i32, i32) {
    %c0_i32 = arith.constant 0 : i32
    %c0_i32_0 = arith.constant 0 : i32
    return %arg1, %arg0, %c0_i32 : i32, i32, i32
  }
}

</mosaic_0001>

<bundles_post_ra>
// kernel: tpu_custom_call.1
= control target key start
LH: loop header
LB: loop body
LE: loop exit
PB: predicated region body
PF: predicated region fallthrough
CT: control target
= control target key end

     0   :  { %8 = vsyncpa [#allocation3], 0  ;;  %s478_s0 = inlined_call_operand.hbm [shape: f32[8,512], index: 0, kind: input, shape index: {}]   ;;  %s479_s1 = inlined_call_operand.hbm [shape: f32[8,512], index: 1, kind: input, shape index: {}]   ;;  %s480_s2 = inlined_call_operand.hbm [shape: f32[2,8,512], index: 2, kind: input, shape index: {}]   ;;  %s481_s3 = inlined_call_operand.hbm [shape: f32[2,8,512], index: 3, kind: output, shape index: {}]  }
   0x1   :  { %9 = vsyncpa [#allocation6], 0 }
   0x2   :  { %10 = vsyncpa [#allocation4], 0  ;;  %s291_s12 = smov [#allocation5]   ;;  %s292_s14 = smov [#allocation2]  }
   0x3   :  { %s27_s13 = sshll.u32 %s291_s12, 4  ;;  %s17_s15 = sshll.u32 %s292_s14, 4  ;;  %s28_s13 = int_to_ptr.vmem [resolvable:$true] %s27_s13  ;;  %s18_s15 = int_to_ptr.vmem [resolvable:$true] %s17_s15 }
   0x4   :  { %s197_s18 = scalar_lea.hbm %s479_s1, 512 }
   0x5   :  { %p198_p0 = scmp.ne.s32.totalorder %s479_s1, %s197_s18  ;;  %p201_p1 = scmp.lt.u32.totalorder %s197_s18, %s479_s1 }
   0x7   :  { %p203_p2 = pnand %p201_p1, %p198_p0 }
   0x9   :  { %206 = shalt.err (!%p203_p2)
}
   0xa   :  { %s207_s23 = scalar_lea.vmem %s28_s13, 512  ;;  %p212_p4 = scmp.lt.s32.totalorder %s28_s13, %s28_s13 }
   0xb   :  { %p208_p3 = scmp.ne.s32.totalorder %s28_s13, %s207_s23  ;;  %p213_p5 = scmp.lt.s32.totalorder %s207_s23, %s207_s23 }
   0xd   :  { %p214_p6 = por %p213_p5, %p212_p4 }
   0xf   :  { %p215_p7 = pnand %p214_p6, %p208_p3 }
  0x11   :  { %218 = shalt.err (!%p215_p7)
}
  0x12   :  { %30 = dma.hbm_to_vmem [thread:$0]  %s479_s1, 512, %s28_s13, [#allocation6]  }
  0x13   :  { %s219_s28 = scalar_lea.hbm %s478_s0, 512 }
  0x14   :  { %p220_p8 = scmp.ne.s32.totalorder %s478_s0, %s219_s28  ;;  %p223_p9 = scmp.lt.u32.totalorder %s219_s28, %s478_s0 }
  0x16   :  { %p225_p10 = pnand %p223_p9, %p220_p8 }
  0x18   :  { %228 = shalt.err (!%p225_p10)
}
  0x19   :  { %s229_s6 = scalar_lea.vmem %s18_s15, 512  ;;  %p234_p12 = scmp.lt.s32.totalorder %s18_s15, %s18_s15 }
  0x1a   :  { %p230_p11 = scmp.ne.s32.totalorder %s18_s15, %s229_s6  ;;  %p235_p13 = scmp.lt.s32.totalorder %s229_s6, %s229_s6 }
  0x1c   :  { %p236_p0 = por %p235_p13, %p234_p12 }
  0x1e   :  { %p237_p1 = pnand %p236_p0, %p230_p11 }
  0x20   :  { %240 = shalt.err (!%p237_p1)
}
  0x21   :  { %20 = dma.hbm_to_vmem [thread:$0]  %s478_s0, 512, %s18_s15, [#allocation3]  }
  0x22   :  { %s293_s8 = smov [#allocation7]   ;;  %s241_s12 = scalar_lea.hbm %s480_s2, 1024 }
  0x23   :  { %s36_s9 = sshll.u32 %s293_s8, 4  ;;  %p242_p2 = scmp.ne.s32.totalorder %s480_s2, %s241_s12  ;;  %s37_s9 = int_to_ptr.vmem [resolvable:$true] %s36_s9 }
  0x24   :  { %p245_p3 = scmp.lt.u32.totalorder %s241_s12, %s480_s2 }
  0x26   :  { %p247_p4 = pnand %p245_p3, %p242_p2 }
  0x28   :  { %250 = shalt.err (!%p247_p4)
}
  0x29   :  { %s251_s18 = scalar_lea.vmem %s37_s9, 1024  ;;  %p256_p6 = scmp.lt.s32.totalorder %s37_s9, %s37_s9 }
  0x2a   :  { %p252_p5 = scmp.ne.s32.totalorder %s37_s9, %s251_s18  ;;  %p257_p7 = scmp.lt.s32.totalorder %s251_s18, %s251_s18 }
  0x2c   :  { %p258_p8 = por %p257_p7, %p256_p6 }
  0x2e   :  { %p259_p9 = pnand %p258_p8, %p252_p5 }
  0x30   :  { %262 = shalt.err (!%p259_p9)
}
  0x31   :  { %s294_s0 = smov 512   ;;  %s295_s15 = smov 32  }
  0x32   :  { %42 = dma.hbm_to_vmem [thread:$0]  %s480_s2, 1024, %s37_s9, [#allocation6], %s294_s0, %s294_s0, %s295_s15  }
  0x33   :  { %285 = dma.done.wait [#allocation3], 512  }
  0x34   :  { %286 = vsyncadd [#allocation3], 4294966784 }
  0x35   :  { %287 = dma.done.wait [#allocation6], 1536  }
  0x36   :  { %288 = vsyncadd [#allocation6], 4294965760  ;;  %v53_v0 = vld [vmem:[#allocation7 + $0x8] sm:$0xff]  ;;  %v52_v1 = vld [vmem:[#allocation7] sm:$0xff]  ;;  %s296_s21 = smov 127   ;;  %s297_s2 = smov 1   ;;  %v76_v12 = vlaneseq }
  0x37   :  { %64 = vrot.lane.b32.xlu1 %v53_v0, %s296_s21  ;;  %60 = vrot.lane.b32.xlu0 %v52_v1, %s296_s21  ;;  %v57_v2 = vld [vmem:[#allocation7 + $0x28] sm:$0xff]  ;;  %v56_v3 = vld [vmem:[#allocation7 + $0x20] sm:$0xff]  ;;  %v58_v4 = vld [vmem:[#allocation7 + $0x30] sm:$0xff]  ;;  %s298_s22 = smov [#allocation8]  }
  0x38   :  { %v54_v5 = vld [vmem:[#allocation7 + $0x10] sm:$0xff]  ;;  %v358_v6 = vld [vmem:[#allocation7 + $0x38] sm:$0xff]  ;;  %v374_v15 = vand.u32 127, %v76_v12  ;;  %v132_v23 = vld [vmem:[#allocation2 + $0x8] sm:$0xff]  ;;  %s176_s23 = sshll.u32 %s298_s22, 4  ;;  %s177_s23 = int_to_ptr.vmem [resolvable:$true] %s176_s23 }
  0x39   :  { %v360_v7 = vld [vmem:[#allocation7 + $0x18] sm:$0xff]  ;;  %v131_v24 = vld [vmem:[#allocation2] sm:$0xff]  ;;  %v140_v28 = vmul.f32 %v132_v23, %v53_v0  ;;  %v144_v30 = vmul.f32 %v132_v23, %v57_v2  ;;  %v136_v31 = vld [vmem:[#allocation5 + $0x8] sm:$0xff]  ;;  %s263_s24 = scalar_lea.vmem %s177_s23, 1024  ;;  %p268_p11 = scmp.lt.s32.totalorder %s177_s23, %s177_s23 }
  0x3a   :  { %v112_v16 = vadd.s32 128, %v374_v15  ;;  %v113_v19 = vadd.s32 256, %v374_v15  ;;  %vm103_vm0 = vcmp.lt.s32.totalorder %v374_v15, 1  ;;  %v114_v27 = vadd.s32 384, %v374_v15  ;;  %v133_v34 = vld [vmem:[#allocation2 + $0x10] sm:$0xff]  ;;  %v134_v43 = vld [vmem:[#allocation2 + $0x18] sm:$0xff]  ;;  %p264_p10 = scmp.ne.s32.totalorder %s177_s23, %s263_s24  ;;  %p269_p12 = scmp.lt.s32.totalorder %s263_s24, %s263_s24 }
  0x3b   :  { %66 = vrot.lane.b32.xlu1 %v57_v2, %s296_s21  ;;  %62 = vrot.lane.b32.xlu0 %v56_v3, %s296_s21  ;;  %v386_v29 = vmul.f32 %v131_v24, %v52_v1  ;;  %vm78_vm2 = vcmp.lt.s32.totalorder %v374_v15, 127  ;;  %v143_v39 = vmul.f32 %v131_v24, %v56_v3  ;;  %v115_v46 = vand.u32 1, %v374_v15  ;;  %v137_v52 = vld [vmem:[#allocation5 + $0x10] sm:$0xff]  ;;  %v138_v12 = vld [vmem:[#allocation5 + $0x18] sm:$0xff] }
  0x3c   :  { %v116_v20 = vand.u32 1, %v112_v16  ;;  %v117_v25 = vand.u32 1, %v113_v19  ;;  %v118_v47 = vand.u32 1, %v114_v27  ;;  %v145_v48 = vmul.f32 %v133_v34, %v58_v4  ;;  %p270_p13 = por %p269_p12, %p268_p11 }
  0x3d   :  { %v141_v49 = vmul.f32 %v133_v34, %v54_v5  ;;  %v146_v59 = vmul.f32 %v134_v43, %v358_v6  ;;  %v142_v60 = vmul.f32 %v134_v43, %v360_v7  ;;  %vm423_vm4 = vcmp.eq.s32.totalorder %v115_v46, 0 }
  0x3e   :  { %vm381_vm1 = vcmp.eq.s32.totalorder %v116_v20, 0  ;;  %vm404_vm3 = vcmp.eq.s32.totalorder %v117_v25, 0  ;;  %vm427_vm5 = vcmp.eq.s32.totalorder %v118_v47, 0  ;;  %p271_p0 = pnand %p270_p13, %p264_p10 }
  0x3f   :  { %70 = vrot.lane.b32.xlu1 %v58_v4, %s296_s21  ;;  %68 = vrot.lane.b32.xlu0 %v54_v5, %s296_s21 }
  0x43   :  { %74 = vrot.lane.b32.xlu1 %v358_v6, %s296_s21  ;;  %72 = vrot.lane.b32.xlu0 %v360_v7, %s296_s21 }
  0x47   :  { %89 = vrot.lane.b32.xlu1 %v56_v3, %s297_s2  ;;  %87 = vrot.lane.b32.xlu0 %v52_v1, %s297_s2 }
  0x4b   :  { %93 = vrot.lane.b32.xlu1 %v57_v2, %s297_s2  ;;  %91 = vrot.lane.b32.xlu0 %v53_v0, %s297_s2 }
  0x4f   :  { %97 = vrot.lane.b32.xlu1 %v58_v4, %s297_s2  ;;  %95 = vrot.lane.b32.xlu0 %v54_v5, %s297_s2 }
  0x53   :  { %101 = vrot.lane.b32.xlu1 %v358_v6, %s297_s2  ;;  %99 = vrot.lane.b32.xlu0 %v360_v7, %s297_s2  ;;  %v135_v7 = vld [vmem:[#allocation5] sm:$0xff] }
  0xa9   :  { %v366_v8 = vpop.permute.xlu1 %64  ;;  %v368_v9 = vpop.permute.xlu0 %60 }
  0xaa   :  { %v83_v3 = vsel %vm78_vm2, %v368_v9, %v366_v8 }
  0xad   :  { %v370_v10 = vpop.permute.xlu1 %66  ;;  %v372_v11 = vpop.permute.xlu0 %62 }
  0xae   :  { %v84_v4 = vsel %vm78_vm2, %v372_v11, %v370_v10 }
  0xb1   :  { %v71_v13 = vpop.permute.xlu1 %70  ;;  %v69_v14 = vpop.permute.xlu0 %68 }
  0xb2   :  { %v82_v35 = vsel %vm78_vm2, %v370_v10, %v71_v13  ;;  %v81_v36 = vsel %vm78_vm2, %v366_v8, %v69_v14 }
  0xb5   :  { %v75_v17 = vpop.permute.xlu1 %74  ;;  %v73_v18 = vpop.permute.xlu0 %72 }
  0xb6   :  { %v80_v50 = vsel %vm78_vm2, %v71_v13, %v75_v17  ;;  %v79_v51 = vsel %vm78_vm2, %v69_v14, %v73_v18  ;;  %v86_v5 = vsel %vm78_vm2, %v75_v17, %v372_v11  ;;  %v85_v6 = vsel %vm78_vm2, %v73_v18, %v368_v9 }
  0xb9   :  { %v90_v21 = vpop.permute.xlu1 %89  ;;  %v378_v22 = vpop.permute.xlu0 %87 }
  0xbd   :  { %v94_v32 = vpop.permute.xlu1 %93  ;;  %v92_v33 = vpop.permute.xlu0 %91 }
  0xbe   :  { %v109_v37 = vsel %vm103_vm0, %v90_v21, %v94_v32  ;;  %v108_v38 = vsel %vm103_vm0, %v378_v22, %v92_v33 }
  0xbf   :  { %v128_v40 = vsel %vm381_vm1, %v82_v35, %v109_v37  ;;  %v124_v41 = vsel %vm381_vm1, %v81_v36, %v108_v38 }
  0xc0   :  { %v152_v44 = vmul.f32 %v136_v31, %v128_v40  ;;  %v148_v45 = vmul.f32 %v136_v31, %v124_v41 }
  0xc1   :  { %v98_v53 = vpop.permute.xlu1 %97  ;;  %v96_v54 = vpop.permute.xlu0 %95 }
  0xc2   :  { %v160_v55 = vadd.f32 %v152_v44, %v144_v30  ;;  %v156_v56 = vadd.f32 %v148_v45, %v140_v28  ;;  %v107_v57 = vsel %vm103_vm0, %v94_v32, %v98_v53  ;;  %v106_v58 = vsel %vm103_vm0, %v92_v33, %v96_v54 }
  0xc3   :  { %v129_v61 = vsel %vm404_vm3, %v80_v50, %v107_v57  ;;  %v125_v62 = vsel %vm404_vm3, %v79_v51, %v106_v58 }
  0xc4   :  { %168 = vst [vmem:[#allocation8 + $0x28] sm:$0xff] %v160_v55  ;;  %164 = vst [vmem:[#allocation8 + $0x8] sm:$0xff] %v156_v56  ;;  %v153_v63 = vmul.f32 %v137_v52, %v129_v61  ;;  %v149_v0 = vmul.f32 %v137_v52, %v125_v62 }
  0xc5   :  { %v102_v13 = vpop.permute.xlu1 %101  ;;  %v100_v14 = vpop.permute.xlu0 %99 }
  0xc6   :  { %v161_v16 = vadd.f32 %v153_v63, %v145_v48  ;;  %v157_v19 = vadd.f32 %v149_v0, %v141_v49  ;;  %v105_v8 = vsel %vm103_vm0, %v98_v53, %v102_v13  ;;  %v111_v10 = vsel %vm103_vm0, %v102_v13, %v90_v21 }
  0xc7   :  { %v127_v20 = vsel %vm423_vm4, %v84_v4, %v111_v10  ;;  %v130_v11 = vsel %vm427_vm5, %v86_v5, %v105_v8  ;;  %v104_v9 = vsel %vm103_vm0, %v96_v54, %v100_v14  ;;  %v110_v17 = vsel %vm103_vm0, %v100_v14, %v378_v22 }
  0xc8   :  { %169 = vst [vmem:[#allocation8 + $0x30] sm:$0xff] %v161_v16  ;;  %165 = vst [vmem:[#allocation8 + $0x10] sm:$0xff] %v157_v19  ;;  %v151_v18 = vmul.f32 %v135_v7, %v127_v20  ;;  %v154_v23 = vmul.f32 %v138_v12, %v130_v11  ;;  %v123_v21 = vsel %vm423_vm4, %v83_v3, %v110_v17 }
  0xc9   :  { %v126_v24 = vsel %vm427_vm5, %v85_v6, %v104_v9  ;;  %v147_v25 = vmul.f32 %v135_v7, %v123_v21 }
  0xca   :  { %v150_v26 = vmul.f32 %v138_v12, %v126_v24  ;;  %v159_v27 = vadd.f32 %v151_v18, %v143_v39  ;;  %v162_v28 = vadd.f32 %v154_v23, %v146_v59 }
  0xcb   :  { %v155_v30 = vadd.f32 %v147_v25, %v386_v29 }
  0xcc   :  { %v158_v15 = vadd.f32 %v150_v26, %v142_v60  ;;  %167 = vst [vmem:[#allocation8 + $0x20] sm:$0xff] %v159_v27  ;;  %170 = vst [vmem:[#allocation8 + $0x38] sm:$0xff] %v162_v28 }
  0xcd   :  { %163 = vst [vmem:[#allocation8] sm:$0xff] %v155_v30 }
  0xce   :  { %166 = vst [vmem:[#allocation8 + $0x18] sm:$0xff] %v158_v15 }
  0xcf   :  { %274 = shalt.err (!%p271_p0)
}
  0xd0   :  { %s275_s27 = scalar_lea.hbm %s481_s3, 1024 }
  0xd1   :  { %p276_p1 = scmp.ne.s32.totalorder %s481_s3, %s275_s27  ;;  %p279_p2 = scmp.lt.u32.totalorder %s275_s27, %s481_s3 }
  0xd3   :  { %p281_p3 = pnand %p279_p2, %p276_p1 }
  0xd5   :  { %284 = shalt.err (!%p281_p3)
}
  0xd6   :  { %182 = dma.vmem_to_hbm [thread:$0]  %s177_s23, 1024, %s481_s3, [#allocation4], %s294_s0, %s294_s0, %s295_s15  }
  0xd7   :  { %289 = dma.done.wait [#allocation4], 1024  }
  0xd8   :  { %290 = vsyncadd [#allocation4], 4294966272 }
  0xd9   :  { %186 = vsyncpa [#allocation3], 1 }
  0xda   :  { %187 = vsyncpa [#allocation6], 1 }
  0xdb   :  { %188 = vsyncpa [#allocation4], 1 }

</bundles_post_ra>
